<compile_context>
chip_gen: v7x
topology: tpu7x:2x2x1
jax: 0.10.0
libtpu: 0.0.40
codegen_flags: <defaults>
</compile_context>

<pallas_src>
import functools

import jax
import jax.numpy as jnp
from jax.experimental import pallas as pl
from jax.experimental.pallas import tpu as pltpu


# -----------------------------------------------------------------------------
# Small helpers.
# -----------------------------------------------------------------------------
def _round_up(x, m):
    return (x + m - 1) // m * m


def _pick_batch_tile(n, l, target_rows=512):
    """Largest divisor b of n with b*l <= target_rows; keep grid extent >= 2."""
    best = 1
    for b in range(1, n + 1):
        if n % b == 0 and b * l <= target_rows:
            best = b
    if best == n and n > 1:
        # Keep at least 2 grid steps so both v7x TensorCores get work.
        best = max(b for b in range(1, n) if n % b == 0)
    return best


def _largest_divisor_leq(n, cap):
    for b in range(min(n, cap), 0, -1):
        if n % b == 0:
            return b
    return 1


# -----------------------------------------------------------------------------
# Kernel 1: Conv1d(k, 'same', stride=1, bias=False) + BN(scale/shift) + ReLU
#           + MaxPool1d(2), B samples per grid step.  Optionally fuses the
#           global average pool (AdaptiveAvgPool1d(1)) for the last block.
# -----------------------------------------------------------------------------
def conv_block_kernel(x_ref, w_ref, scale_ref, shift_ref, o_ref, xpad_ref,
                      *, K, L, B, Lp, fuse_avgpool):
    pad = (K - 1) // 2
    lout = L // 2
    m_half = (B * Lp) // 2           # rows of the pooled (even/odd) accumulators
    cin = x_ref.shape[-1]
    cout = w_ref.shape[-1]
    mxu_dtype = w_ref.dtype          # bf16 or f32 MXU inputs

    # --- Stage B zero-padded samples into the flat (B*Lp + K, cin) buffer. ---
    # Only halo / filler rows are zeroed; the interior is overwritten.
    tail = Lp - pad - L
    for b in range(B):
        base = b * Lp
        xpad_ref[pl.ds(base, pad), :] = jnp.zeros((pad, cin), jnp.float32)
        xpad_ref[pl.ds(base + pad, L), :] = x_ref[b].astype(jnp.float32)
        xpad_ref[pl.ds(base + pad + L, tail), :] = jnp.zeros((tail, cin),
                                                             jnp.float32)
    xpad_ref[pl.ds(B * Lp, K), :] = jnp.zeros((K, cin), jnp.float32)

    # --- Conv as K shifted matmuls, fused with MaxPool1d(2): even and odd ----
    # conv-output rows are accumulated separately via stride-2 reads (MXU M
    # dimension = m_half = B*Lp/2 rows), accumulating in f32.
    acc_e = jnp.zeros((m_half, cout), jnp.float32)
    acc_o = jnp.zeros((m_half, cout), jnp.float32)
    for k in range(K):
        w_k = w_ref[k]
        lhs_e = xpad_ref[pl.ds(k, m_half, 2), :].astype(mxu_dtype)
        lhs_o = xpad_ref[pl.ds(k + 1, m_half, 2), :].astype(mxu_dtype)
        acc_e = acc_e + jnp.dot(lhs_e, w_k, preferred_element_type=jnp.float32)
        acc_o = acc_o + jnp.dot(lhs_o, w_k, preferred_element_type=jnp.float32)

    # --- Folded BatchNorm + ReLU (f32, VPU), MaxPool in registers. -----------
    scale = scale_ref[...]
    shift = shift_ref[...]
    y_e = jnp.maximum(acc_e * scale + shift, 0.0)
    y_o = jnp.maximum(acc_o * scale + shift, 0.0)
    pooled = jnp.maximum(y_e, y_o)   # rows [b*Lp/2, b*Lp/2 + lout) are valid

    stride = Lp // 2                 # sublane-aligned per-sample stride
    if fuse_avgpool:
        inv_l = 1.0 / float(lout)
        for b in range(B):
            seg = pooled[b * stride:b * stride + lout, :]
            o_ref[pl.ds(b, 1), :] = (
                jnp.sum(seg, axis=0, keepdims=True) * inv_l).astype(o_ref.dtype)
    else:
        for b in range(B):
            o_ref[b] = pooled[b * stride:b * stride + lout, :].astype(o_ref.dtype)


def conv_block(x_nlc, w_kio, scale, shift, *, fuse_avgpool=False):
    """x_nlc: (N, L, Cin); w_kio: (K, Cin, Cout); scale/shift: (1, Cout) f32."""
    N, L, Cin = x_nlc.shape
    K, _, Cout = w_kio.shape
    assert K % 2 == 1, "conv kernel size must be odd for 'same' padding"
    assert L % 2 == 0, "MaxPool1d(2) requires an even length"
    Lout = L // 2
    B = _pick_batch_tile(N, L)
    G = N // B
    # Per-sample padded span, rounded up so the pooled per-sample stride
    # (Lp // 2) is a multiple of 8 (sublane-aligned extraction slices).
    Lp = _round_up(L + K - 1, 16)

    kernel = functools.partial(conv_block_kernel, K=K, L=L, B=B, Lp=Lp,
                               fuse_avgpool=fuse_avgpool)
    if fuse_avgpool:
        out_shape = jax.ShapeDtypeStruct((N, Cout), jnp.float32)
        out_spec = pl.BlockSpec((B, Cout), lambda n: (n, 0))
    else:
        out_shape = jax.ShapeDtypeStruct((N, Lout, Cout), x_nlc.dtype)
        out_spec = pl.BlockSpec((B, Lout, Cout), lambda n: (n, 0, 0))

    return pl.pallas_call(
        kernel,
        out_shape=out_shape,
        grid_spec=pltpu.PrefetchScalarGridSpec(
            num_scalar_prefetch=0,
            grid=(G,),
            in_specs=[
                pl.BlockSpec((B, L, Cin), lambda n: (n, 0, 0)),
                pl.BlockSpec((K, Cin, Cout), lambda n: (0, 0, 0)),
                pl.BlockSpec((1, Cout), lambda n: (0, 0)),
                pl.BlockSpec((1, Cout), lambda n: (0, 0)),
            ],
            out_specs=out_spec,
            scratch_shapes=[
                pltpu.VMEM((B * Lp + K, Cin), jnp.float32),
            ],
        ),
        compiler_params=pltpu.CompilerParams(
            dimension_semantics=("parallel",)),
    )(x_nlc, w_kio, scale, shift)


# -----------------------------------------------------------------------------
# Kernel 2: batched head — fc1 + fc2 + out on the (N, 256) pooled tensor
#           (no activations between FCs, matching the PyTorch forward).
# -----------------------------------------------------------------------------
def head_kernel(x_ref, w1_ref, b1_ref, w2_ref, b2_ref, w3_ref, b3_ref, o_ref):
    cdt = w1_ref.dtype
    h = jnp.dot(x_ref[...].astype(cdt), w1_ref[...],
                preferred_element_type=jnp.float32) + b1_ref[...]
    h = jnp.dot(h.astype(cdt), w2_ref[...],
                preferred_element_type=jnp.float32) + b2_ref[...]
    h = jnp.dot(h.astype(cdt), w3_ref[...],
                preferred_element_type=jnp.float32) + b3_ref[...]
    o_ref[...] = h.astype(o_ref.dtype)


def head(pooled, w1, b1, w2, b2, w3, b3):
    """pooled: (N, 256) f32; wX: (in, out); bX: (1, out) f32."""
    N, C = pooled.shape
    H1, H2, NC = w1.shape[1], w2.shape[1], w3.shape[1]
    TB = _largest_divisor_leq(N, 256)
    G = N // TB
    return pl.pallas_call(
        head_kernel,
        out_shape=jax.ShapeDtypeStruct((N, NC), jnp.float32),
        grid_spec=pltpu.PrefetchScalarGridSpec(
            num_scalar_prefetch=0,
            grid=(G,),
            in_specs=[
                pl.BlockSpec((TB, C), lambda n: (n, 0)),
                pl.BlockSpec((C, H1), lambda n: (0, 0)),
                pl.BlockSpec((1, H1), lambda n: (0, 0)),
                pl.BlockSpec((H1, H2), lambda n: (0, 0)),
                pl.BlockSpec((1, H2), lambda n: (0, 0)),
                pl.BlockSpec((H2, NC), lambda n: (0, 0)),
                pl.BlockSpec((1, NC), lambda n: (0, 0)),
            ],
            out_specs=pl.BlockSpec((TB, NC), lambda n: (n, 0)),
        ),
        compiler_params=pltpu.CompilerParams(
            dimension_semantics=("parallel",)),
    )(pooled, w1, b1, w2, b2, w3, b3)


# -----------------------------------------------------------------------------
# Parameter construction (deterministic, PyTorch shapes) and full forward.
# -----------------------------------------------------------------------------
def init_params(key, inchannel, num_classes):
    ks = jax.random.split(key, 12)
    eps = 1e-5

    def conv_bn(kw, kg, kb, cin, cout, ksize=7):
        # PyTorch Conv1d weight: (Cout, Cin, K)
        w = 0.1 * jax.random.normal(kw, (cout, cin, ksize), jnp.float32)
        gamma = 1.0 + 0.1 * jax.random.normal(kg, (cout,), jnp.float32)
        beta = 0.1 * jax.random.normal(kb, (cout,), jnp.float32)
        run_mean = jnp.zeros((cout,), jnp.float32)
        run_var = jnp.ones((cout,), jnp.float32)
        scale = gamma / jnp.sqrt(run_var + eps)
        shift = beta - run_mean * scale
        # Pallas layout: (K, Cin, Cout), scale/shift as (1, Cout).
        w_kio = jnp.transpose(w, (2, 1, 0))
        return w_kio, scale[None, :], shift[None, :]

    def linear(kw, kb, fin, fout):
        # PyTorch Linear: weight (fout, fin), y = x @ W.T + b.
        w = 0.1 * jax.random.normal(kw, (fout, fin), jnp.float32)
        b = 0.1 * jax.random.normal(kb, (fout,), jnp.float32)
        return w.T, b[None, :]  # (fin, fout), (1, fout)

    p = {}
    p["c1"] = conv_bn(ks[0], ks[1], ks[2], inchannel, 64)
    p["c2"] = conv_bn(ks[3], ks[4], ks[5], 64, 128)
    p["c3"] = conv_bn(ks[6], ks[7], ks[8], 128, 256)
    p["fc1"] = linear(ks[9], jax.random.fold_in(ks[9], 1), 256, 128)
    p["fc2"] = linear(ks[10], jax.random.fold_in(ks[10], 1), 128, 64)
    p["out"] = linear(ks[11], jax.random.fold_in(ks[11], 1), 64, num_classes)
    return p


def convnet_forward(x_ncl, p, compute_dtype=jnp.float32):
    """x_ncl: (N, Cin, L) as in PyTorch; returns (N, num_classes) f32."""
    cdt = compute_dtype
    x = jnp.transpose(x_ncl, (0, 2, 1)).astype(cdt)      # -> (N, L, Cin)
    x = conv_block(x, p["c1"][0].astype(cdt), p["c1"][1], p["c1"][2])
    x = conv_block(x, p["c2"][0].astype(cdt), p["c2"][1], p["c2"][2])
    pooled = conv_block(x, p["c3"][0].astype(cdt), p["c3"][1], p["c3"][2],
                        fuse_avgpool=True)                # (N, 256) f32
    return head(pooled,
                p["fc1"][0].astype(cdt), p["fc1"][1],
                p["fc2"][0].astype(cdt), p["fc2"][1],
                p["out"][0].astype(cdt), p["out"][1])


# -----------------------------------------------------------------------------
# Pure-JAX reference (NCL layout, same math) for correctness checking.
# -----------------------------------------------------------------------------
def ref_forward(x_ncl, p):
    def block(x, w_kio, scale, shift):
        w_oik = jnp.transpose(w_kio, (2, 1, 0))  # (Cout, Cin, K)
        y = jax.lax.conv_general_dilated(
            x, w_oik, window_strides=(1,), padding=[(3, 3)],
            dimension_numbers=("NCH", "OIH", "NCH"))
        y = y * scale[0][None, :, None] + shift[0][None, :, None]
        y = jnp.maximum(y, 0.0)
        N, C, L = y.shape
        return y.reshape(N, C, L // 2, 2).max(axis=-1)

    x = block(x_ncl, *p["c1"])
    x = block(x, *p["c2"])
    x = block(x, *p["c3"])
    x = jnp.mean(x, axis=-1)  # AdaptiveAvgPool1d(1) + flatten -> (N, 256)
    x = x @ p["fc1"][0] + p["fc1"][1]
    x = x @ p["fc2"][0] + p["fc2"][1]
    x = x @ p["out"][0] + p["out"][1]
    return x


if __name__ == "__main__":
    N, CIN, L, NUM_CLASSES = 4, 4, 32, 10
    key = jax.random.PRNGKey(0)
    kx, kp = jax.random.split(key)
    x = jax.random.normal(kx, (N, CIN, L), jnp.float32)  # PyTorch NCL input
    params = init_params(kp, CIN, NUM_CLASSES)

    ref = jax.block_until_ready(ref_forward(x, params))

    # f32 compute path: strict numerical check against the pure-JAX reference.
    out = jax.block_until_ready(convnet_forward(x, params, jnp.float32))
    assert out.shape == (N, NUM_CLASSES), out.shape
    err = jnp.max(jnp.abs(out - ref))
    assert jnp.allclose(out, ref, rtol=1e-4, atol=1e-4), f"f32 max abs err = {err}"

    # bf16 MXU-input path (perf config; f32 accumulation/epilogue): loose check
    # against the f32 reference since inputs/weights are quantized to bf16.
    out_bf16 = jax.block_until_ready(convnet_forward(x, params, jnp.bfloat16))
    err_bf16 = jnp.max(jnp.abs(out_bf16 - ref))
    assert err_bf16 < 0.25, f"bf16 max abs err = {err_bf16}"

    print("KERNEL_OK")
</pallas_src>

<mosaic_0001>
module attributes {stable_mosaic.version = 11 : i64} {
  func.func @conv_block_kernel(%arg0: i32, %arg1: memref<2x32x4xf32, #tpu.memory_space<vmem>>, %arg2: memref<7x4x64xf32, #tpu.memory_space<vmem>>, %arg3: memref<1x64xf32, #tpu.memory_space<vmem>>, %arg4: memref<1x64xf32, #tpu.memory_space<vmem>>, %arg5: memref<2x16x64xf32, #tpu.memory_space<vmem>>, %arg6: memref<103x4xf32, #tpu.memory_space<vmem>>) attributes {dimension_semantics = [#tpu.dimension_semantics<parallel>], iteration_bounds = array<i64: 2>, scalar_prefetch = 0 : i64, scratch_operands = 1 : i64, tpu.core_type = #tpu.core_type<tc>, window_params = [{transform_indices = @transform_0, window_bounds = array<i64: 2, 32, 4>}, {pipeline_mode = #tpu.pipeline_mode<synchronous>, transform_indices = @transform_1, window_bounds = array<i64: 7, 4, 64>}, {pipeline_mode = #tpu.pipeline_mode<synchronous>, transform_indices = @transform_2, window_bounds = array<i64: 1, 64>}, {pipeline_mode = #tpu.pipeline_mode<synchronous>, transform_indices = @transform_3, window_bounds = array<i64: 1, 64>}, {transform_indices = @transform_4, window_bounds = array<i64: 2, 16, 64>}]} {
    %cst = arith.constant 0.000000e+00 : f32
    %0 = vector.broadcast %cst : f32 to vector<3x4xf32>
    %c0 = arith.constant 0 : index
    %c0_0 = arith.constant 0 : index
    %1 = vector.load %arg6[%c0, %c0_0] : memref<103x4xf32, #tpu.memory_space<vmem>>, vector<3x4xf32>
    tpu.vector_store %arg6[%c0, %c0_0], %0 {strides = array<i32>} : memref<103x4xf32, #tpu.memory_space<vmem>>, vector<3x4xf32>,
    %c0_1 = arith.constant 0 : index
    %c0_2 = arith.constant 0 : index
    %c0_3 = arith.constant 0 : index
    %2 = vector.load %arg1[%c0_1, %c0_2, %c0_3] : memref<2x32x4xf32, #tpu.memory_space<vmem>>, vector<1x32x4xf32>
    %3 = vector.shape_cast %2 : vector<1x32x4xf32> to vector<32x4xf32>
    %c3 = arith.constant 3 : index
    %c0_4 = arith.constant 0 : index
    %4 = vector.load %arg6[%c3, %c0_4] : memref<103x4xf32, #tpu.memory_space<vmem>>, vector<32x4xf32>
    tpu.vector_store %arg6[%c3, %c0_4], %3 {strides = array<i32>} : memref<103x4xf32, #tpu.memory_space<vmem>>, vector<32x4xf32>,
    %cst_5 = arith.constant 0.000000e+00 : f32
    %5 = vector.broadcast %cst_5 : f32 to vector<13x4xf32>
    %c35 = arith.constant 35 : index
    %c0_6 = arith.constant 0 : index
    %6 = vector.load %arg6[%c35, %c0_6] : memref<103x4xf32, #tpu.memory_space<vmem>>, vector<13x4xf32>
    tpu.vector_store %arg6[%c35, %c0_6], %5 {strides = array<i32>} : memref<103x4xf32, #tpu.memory_space<vmem>>, vector<13x4xf32>,
    %cst_7 = arith.constant 0.000000e+00 : f32
    %7 = vector.broadcast %cst_7 : f32 to vector<3x4xf32>
    %c48 = arith.constant 48 : index
    %c0_8 = arith.constant 0 : index
    %8 = vector.load %arg6[%c48, %c0_8] : memref<103x4xf32, #tpu.memory_space<vmem>>, vector<3x4xf32>
    tpu.vector_store %arg6[%c48, %c0_8], %7 {strides = array<i32>} : memref<103x4xf32, #tpu.memory_space<vmem>>, vector<3x4xf32>,
    %c1 = arith.constant 1 : index
    %c0_9 = arith.constant 0 : index
    %c0_10 = arith.constant 0 : index
    %9 = vector.load %arg1[%c1, %c0_9, %c0_10] : memref<2x32x4xf32, #tpu.memory_space<vmem>>, vector<1x32x4xf32>
    %10 = vector.shape_cast %9 : vector<1x32x4xf32> to vector<32x4xf32>
    %c51 = arith.constant 51 : index
    %c0_11 = arith.constant 0 : index
    %11 = vector.load %arg6[%c51, %c0_11] : memref<103x4xf32, #tpu.memory_space<vmem>>, vector<32x4xf32>
    tpu.vector_store %arg6[%c51, %c0_11], %10 {strides = array<i32>} : memref<103x4xf32, #tpu.memory_space<vmem>>, vector<32x4xf32>,
    %cst_12 = arith.constant 0.000000e+00 : f32
    %12 = vector.broadcast %cst_12 : f32 to vector<13x4xf32>
    %c83 = arith.constant 83 : index
    %c0_13 = arith.constant 0 : index
    %13 = vector.load %arg6[%c83, %c0_13] : memref<103x4xf32, #tpu.memory_space<vmem>>, vector<13x4xf32>
    tpu.vector_store %arg6[%c83, %c0_13], %12 {strides = array<i32>} : memref<103x4xf32, #tpu.memory_space<vmem>>, vector<13x4xf32>,
    %cst_14 = arith.constant 0.000000e+00 : f32
    %14 = vector.broadcast %cst_14 : f32 to vector<7x4xf32>
    %c96 = arith.constant 96 : index
    %c0_15 = arith.constant 0 : index
    %15 = vector.load %arg6[%c96, %c0_15] : memref<103x4xf32, #tpu.memory_space<vmem>>, vector<7x4xf32>
    tpu.vector_store %arg6[%c96, %c0_15], %14 {strides = array<i32>} : memref<103x4xf32, #tpu.memory_space<vmem>>, vector<7x4xf32>,
    %cst_16 = arith.constant 0.000000e+00 : f32
    %16 = vector.broadcast %cst_16 : f32 to vector<48x64xf32>
    %cst_17 = arith.constant 0.000000e+00 : f32
    %17 = vector.broadcast %cst_17 : f32 to vector<48x64xf32>
    %c0_18 = arith.constant 0 : index
    %c0_19 = arith.constant 0 : index
    %c0_20 = arith.constant 0 : index
    %18 = vector.load %arg2[%c0_18, %c0_19, %c0_20] : memref<7x4x64xf32, #tpu.memory_space<vmem>>, vector<1x4x64xf32>
    %19 = vector.shape_cast %18 : vector<1x4x64xf32> to vector<4x64xf32>
    %c0_21 = arith.constant 0 : index
    %c0_22 = arith.constant 0 : index
    %20 = tpu.strided_load %arg6[%c0_21, %c0_22] {strides = array<i32: 2, 1>} : memref<103x4xf32, #tpu.memory_space<vmem>>, vector<48x4xf32>
    %c1_23 = arith.constant 1 : index
    %c0_24 = arith.constant 0 : index
    %21 = tpu.strided_load %arg6[%c1_23, %c0_24] {strides = array<i32: 2, 1>} : memref<103x4xf32, #tpu.memory_space<vmem>>, vector<48x4xf32>
    %cst_25 = arith.constant dense<0.000000e+00> : vector<48x64xf32>
    %22 = tpu.matmul %20, %19, %cst_25 {dimension_numbers = #tpu.dot_dimension_numbers<[1], [0], [0], [1], [0, 0, 1, 1], [], []>} : vector<48x4xf32>, vector<4x64xf32>, vector<48x64xf32> -> vector<48x64xf32>
    %23 = arith.addf %16, %22 : vector<48x64xf32>
    %cst_26 = arith.constant dense<0.000000e+00> : vector<48x64xf32>
    %24 = tpu.matmul %21, %19, %cst_26 {dimension_numbers = #tpu.dot_dimension_numbers<[1], [0], [0], [1], [0, 0, 1, 1], [], []>} : vector<48x4xf32>, vector<4x64xf32>, vector<48x64xf32> -> vector<48x64xf32>
    %25 = arith.addf %17, %24 : vector<48x64xf32>
    %c1_27 = arith.constant 1 : index
    %c0_28 = arith.constant 0 : index
    %c0_29 = arith.constant 0 : index
    %26 = vector.load %arg2[%c1_27, %c0_28, %c0_29] : memref<7x4x64xf32, #tpu.memory_space<vmem>>, vector<1x4x64xf32>
    %27 = vector.shape_cast %26 : vector<1x4x64xf32> to vector<4x64xf32>
    %c1_30 = arith.constant 1 : index
    %c0_31 = arith.constant 0 : index
    %28 = tpu.strided_load %arg6[%c1_30, %c0_31] {strides = array<i32: 2, 1>} : memref<103x4xf32, #tpu.memory_space<vmem>>, vector<48x4xf32>
    %c2 = arith.constant 2 : index
    %c0_32 = arith.constant 0 : index
    %29 = tpu.strided_load %arg6[%c2, %c0_32] {strides = array<i32: 2, 1>} : memref<103x4xf32, #tpu.memory_space<vmem>>, vector<48x4xf32>
    %cst_33 = arith.constant dense<0.000000e+00> : vector<48x64xf32>
    %30 = tpu.matmul %28, %27, %cst_33 {dimension_numbers = #tpu.dot_dimension_numbers<[1], [0], [0], [1], [0, 0, 1, 1], [], []>} : vector<48x4xf32>, vector<4x64xf32>, vector<48x64xf32> -> vector<48x64xf32>
    %31 = arith.addf %23, %30 : vector<48x64xf32>
    %cst_34 = arith.constant dense<0.000000e+00> : vector<48x64xf32>
    %32 = tpu.matmul %29, %27, %cst_34 {dimension_numbers = #tpu.dot_dimension_numbers<[1], [0], [0], [1], [0, 0, 1, 1], [], []>} : vector<48x4xf32>, vector<4x64xf32>, vector<48x64xf32> -> vector<48x64xf32>
    %33 = arith.addf %25, %32 : vector<48x64xf32>
    %c2_35 = arith.constant 2 : index
    %c0_36 = arith.constant 0 : index
    %c0_37 = arith.constant 0 : index
    %34 = vector.load %arg2[%c2_35, %c0_36, %c0_37] : memref<7x4x64xf32, #tpu.memory_space<vmem>>, vector<1x4x64xf32>
    %35 = vector.shape_cast %34 : vector<1x4x64xf32> to vector<4x64xf32>
    %c2_38 = arith.constant 2 : index
    %c0_39 = arith.constant 0 : index
    %36 = tpu.strided_load %arg6[%c2_38, %c0_39] {strides = array<i32: 2, 1>} : memref<103x4xf32, #tpu.memory_space<vmem>>, vector<48x4xf32>
    %c3_40 = arith.constant 3 : index
    %c0_41 = arith.constant 0 : index
    %37 = tpu.strided_load %arg6[%c3_40, %c0_41] {strides = array<i32: 2, 1>} : memref<103x4xf32, #tpu.memory_space<vmem>>, vector<48x4xf32>
    %cst_42 = arith.constant dense<0.000000e+00> : vector<48x64xf32>
    %38 = tpu.matmul %36, %35, %cst_42 {dimension_numbers = #tpu.dot_dimension_numbers<[1], [0], [0], [1], [0, 0, 1, 1], [], []>} : vector<48x4xf32>, vector<4x64xf32>, vector<48x64xf32> -> vector<48x64xf32>
    %39 = arith.addf %31, %38 : vector<48x64xf32>
    %cst_43 = arith.constant dense<0.000000e+00> : vector<48x64xf32>
    %40 = tpu.matmul %37, %35, %cst_43 {dimension_numbers = #tpu.dot_dimension_numbers<[1], [0], [0], [1], [0, 0, 1, 1], [], []>} : vector<48x4xf32>, vector<4x64xf32>, vector<48x64xf32> -> vector<48x64xf32>
    %41 = arith.addf %33, %40 : vector<48x64xf32>
    %c3_44 = arith.constant 3 : index
    %c0_45 = arith.constant 0 : index
    %c0_46 = arith.constant 0 : index
    %42 = vector.load %arg2[%c3_44, %c0_45, %c0_46] : memref<7x4x64xf32, #tpu.memory_space<vmem>>, vector<1x4x64xf32>
    %43 = vector.shape_cast %42 : vector<1x4x64xf32> to vector<4x64xf32>
    %c3_47 = arith.constant 3 : index
    %c0_48 = arith.constant 0 : index
    %44 = tpu.strided_load %arg6[%c3_47, %c0_48] {strides = array<i32: 2, 1>} : memref<103x4xf32, #tpu.memory_space<vmem>>, vector<48x4xf32>
    %c4 = arith.constant 4 : index
    %c0_49 = arith.constant 0 : index
    %45 = tpu.strided_load %arg6[%c4, %c0_49] {strides = array<i32: 2, 1>} : memref<103x4xf32, #tpu.memory_space<vmem>>, vector<48x4xf32>
    %cst_50 = arith.constant dense<0.000000e+00> : vector<48x64xf32>
    %46 = tpu.matmul %44, %43, %cst_50 {dimension_numbers = #tpu.dot_dimension_numbers<[1], [0], [0], [1], [0, 0, 1, 1], [], []>} : vector<48x4xf32>, vector<4x64xf32>, vector<48x64xf32> -> vector<48x64xf32>
    %47 = arith.addf %39, %46 : vector<48x64xf32>
    %cst_51 = arith.constant dense<0.000000e+00> : vector<48x64xf32>
    %48 = tpu.matmul %45, %43, %cst_51 {dimension_numbers = #tpu.dot_dimension_numbers<[1], [0], [0], [1], [0, 0, 1, 1], [], []>} : vector<48x4xf32>, vector<4x64xf32>, vector<48x64xf32> -> vector<48x64xf32>
    %49 = arith.addf %41, %48 : vector<48x64xf32>
    %c4_52 = arith.constant 4 : index
    %c0_53 = arith.constant 0 : index
    %c0_54 = arith.constant 0 : index
    %50 = vector.load %arg2[%c4_52, %c0_53, %c0_54] : memref<7x4x64xf32, #tpu.memory_space<vmem>>, vector<1x4x64xf32>
    %51 = vector.shape_cast %50 : vector<1x4x64xf32> to vector<4x64xf32>
    %c4_55 = arith.constant 4 : index
    %c0_56 = arith.constant 0 : index
    %52 = tpu.strided_load %arg6[%c4_55, %c0_56] {strides = array<i32: 2, 1>} : memref<103x4xf32, #tpu.memory_space<vmem>>, vector<48x4xf32>
    %c5 = arith.constant 5 : index
    %c0_57 = arith.constant 0 : index
    %53 = tpu.strided_load %arg6[%c5, %c0_57] {strides = array<i32: 2, 1>} : memref<103x4xf32, #tpu.memory_space<vmem>>, vector<48x4xf32>
    %cst_58 = arith.constant dense<0.000000e+00> : vector<48x64xf32>
    %54 = tpu.matmul %52, %51, %cst_58 {dimension_numbers = #tpu.dot_dimension_numbers<[1], [0], [0], [1], [0, 0, 1, 1], [], []>} : vector<48x4xf32>, vector<4x64xf32>, vector<48x64xf32> -> vector<48x64xf32>
    %55 = arith.addf %47, %54 : vector<48x64xf32>
    %cst_59 = arith.constant dense<0.000000e+00> : vector<48x64xf32>
    %56 = tpu.matmul %53, %51, %cst_59 {dimension_numbers = #tpu.dot_dimension_numbers<[1], [0], [0], [1], [0, 0, 1, 1], [], []>} : vector<48x4xf32>, vector<4x64xf32>, vector<48x64xf32> -> vector<48x64xf32>
    %57 = arith.addf %49, %56 : vector<48x64xf32>
    %c5_60 = arith.constant 5 : index
    %c0_61 = arith.constant 0 : index
    %c0_62 = arith.constant 0 : index
    %58 = vector.load %arg2[%c5_60, %c0_61, %c0_62] : memref<7x4x64xf32, #tpu.memory_space<vmem>>, vector<1x4x64xf32>
    %59 = vector.shape_cast %58 : vector<1x4x64xf32> to vector<4x64xf32>
    %c5_63 = arith.constant 5 : index
    %c0_64 = arith.constant 0 : index
    %60 = tpu.strided_load %arg6[%c5_63, %c0_64] {strides = array<i32: 2, 1>} : memref<103x4xf32, #tpu.memory_space<vmem>>, vector<48x4xf32>
    %c6 = arith.constant 6 : index
    %c0_65 = arith.constant 0 : index
    %61 = tpu.strided_load %arg6[%c6, %c0_65] {strides = array<i32: 2, 1>} : memref<103x4xf32, #tpu.memory_space<vmem>>, vector<48x4xf32>
    %cst_66 = arith.constant dense<0.000000e+00> : vector<48x64xf32>
    %62 = tpu.matmul %60, %59, %cst_66 {dimension_numbers = #tpu.dot_dimension_numbers<[1], [0], [0], [1], [0, 0, 1, 1], [], []>} : vector<48x4xf32>, vector<4x64xf32>, vector<48x64xf32> -> vector<48x64xf32>
    %63 = arith.addf %55, %62 : vector<48x64xf32>
    %cst_67 = arith.constant dense<0.000000e+00> : vector<48x64xf32>
    %64 = tpu.matmul %61, %59, %cst_67 {dimension_numbers = #tpu.dot_dimension_numbers<[1], [0], [0], [1], [0, 0, 1, 1], [], []>} : vector<48x4xf32>, vector<4x64xf32>, vector<48x64xf32> -> vector<48x64xf32>
    %65 = arith.addf %57, %64 : vector<48x64xf32>
    %c6_68 = arith.constant 6 : index
    %c0_69 = arith.constant 0 : index
    %c0_70 = arith.constant 0 : index
    %66 = vector.load %arg2[%c6_68, %c0_69, %c0_70] : memref<7x4x64xf32, #tpu.memory_space<vmem>>, vector<1x4x64xf32>
    %67 = vector.shape_cast %66 : vector<1x4x64xf32> to vector<4x64xf32>
    %c6_71 = arith.constant 6 : index
    %c0_72 = arith.constant 0 : index
    %68 = tpu.strided_load %arg6[%c6_71, %c0_72] {strides = array<i32: 2, 1>} : memref<103x4xf32, #tpu.memory_space<vmem>>, vector<48x4xf32>
    %c7 = arith.constant 7 : index
    %c0_73 = arith.constant 0 : index
    %69 = tpu.strided_load %arg6[%c7, %c0_73] {strides = array<i32: 2, 1>} : memref<103x4xf32, #tpu.memory_space<vmem>>, vector<48x4xf32>
    %cst_74 = arith.constant dense<0.000000e+00> : vector<48x64xf32>
    %70 = tpu.matmul %68, %67, %cst_74 {dimension_numbers = #tpu.dot_dimension_numbers<[1], [0], [0], [1], [0, 0, 1, 1], [], []>} : vector<48x4xf32>, vector<4x64xf32>, vector<48x64xf32> -> vector<48x64xf32>
    %71 = arith.addf %63, %70 : vector<48x64xf32>
    %cst_75 = arith.constant dense<0.000000e+00> : vector<48x64xf32>
    %72 = tpu.matmul %69, %67, %cst_75 {dimension_numbers = #tpu.dot_dimension_numbers<[1], [0], [0], [1], [0, 0, 1, 1], [], []>} : vector<48x4xf32>, vector<4x64xf32>, vector<48x64xf32> -> vector<48x64xf32>
    %73 = arith.addf %65, %72 : vector<48x64xf32>
    %c0_76 = arith.constant 0 : index
    %c0_77 = arith.constant 0 : index
    %74 = vector.load %arg3[%c0_76, %c0_77] : memref<1x64xf32, #tpu.memory_space<vmem>>, vector<1x64xf32>
    %c0_78 = arith.constant 0 : index
    %c0_79 = arith.constant 0 : index
    %75 = vector.load %arg4[%c0_78, %c0_79] : memref<1x64xf32, #tpu.memory_space<vmem>>, vector<1x64xf32>
    %76 = vector.broadcast %74 : vector<1x64xf32> to vector<48x64xf32>
    %77 = arith.mulf %71, %76 : vector<48x64xf32>
    %78 = vector.broadcast %75 : vector<1x64xf32> to vector<48x64xf32>
    %79 = arith.addf %77, %78 : vector<48x64xf32>
    %cst_80 = arith.constant 0.000000e+00 : f32
    %80 = vector.broadcast %cst_80 : f32 to vector<48x64xf32>
    %81 = arith.maximumf %79, %80 : vector<48x64xf32>
    %82 = vector.broadcast %74 : vector<1x64xf32> to vector<48x64xf32>
    %83 = arith.mulf %73, %82 : vector<48x64xf32>
    %84 = vector.broadcast %75 : vector<1x64xf32> to vector<48x64xf32>
    %85 = arith.addf %83, %84 : vector<48x64xf32>
    %cst_81 = arith.constant 0.000000e+00 : f32
    %86 = vector.broadcast %cst_81 : f32 to vector<48x64xf32>
    %87 = arith.maximumf %85, %86 : vector<48x64xf32>
    %88 = arith.maximumf %81, %87 : vector<48x64xf32>
    %89 = vector.extract_strided_slice %88 {offsets = [0, 0], sizes = [16, 64], strides = [1, 1]} : vector<48x64xf32> to vector<16x64xf32>
    %c0_82 = arith.constant 0 : index
    %c0_83 = arith.constant 0 : index
    %c0_84 = arith.constant 0 : index
    %90 = vector.load %arg5[%c0_82, %c0_83, %c0_84] : memref<2x16x64xf32, #tpu.memory_space<vmem>>, vector<1x16x64xf32>
    %91 = vector.shape_cast %90 : vector<1x16x64xf32> to vector<16x64xf32>
    %92 = vector.shape_cast %89 : vector<16x64xf32> to vector<1x16x64xf32>
    tpu.vector_store %arg5[%c0_82, %c0_83, %c0_84], %92 {strides = array<i32>} : memref<2x16x64xf32, #tpu.memory_space<vmem>>, vector<1x16x64xf32>,
    %93 = vector.extract_strided_slice %88 {offsets = [24, 0], sizes = [16, 64], strides = [1, 1]} : vector<48x64xf32> to vector<16x64xf32>
    %c1_85 = arith.constant 1 : index
    %c0_86 = arith.constant 0 : index
    %c0_87 = arith.constant 0 : index
    %94 = vector.load %arg5[%c1_85, %c0_86, %c0_87] : memref<2x16x64xf32, #tpu.memory_space<vmem>>, vector<1x16x64xf32>
    %95 = vector.shape_cast %94 : vector<1x16x64xf32> to vector<16x64xf32>
    %96 = vector.shape_cast %93 : vector<16x64xf32> to vector<1x16x64xf32>
    tpu.vector_store %arg5[%c1_85, %c0_86, %c0_87], %96 {strides = array<i32>} : memref<2x16x64xf32, #tpu.memory_space<vmem>>, vector<1x16x64xf32>,
    return
  }
  func.func @transform_0(%arg0: i32) -> (i32, i32, i32) {
    %c0_i32 = arith.constant 0 : i32
    %c0_i32_0 = arith.constant 0 : i32
    %c0_i32_1 = arith.constant 0 : i32
    return %arg0, %c0_i32, %c0_i32_0 : i32, i32, i32
  }
  func.func @transform_1(%arg0: i32) -> (i32, i32, i32) {
    %c0_i32 = arith.constant 0 : i32
    %c0_i32_0 = arith.constant 0 : i32
    %c0_i32_1 = arith.constant 0 : i32
    %c0_i32_2 = arith.constant 0 : i32
    return %c0_i32, %c0_i32_0, %c0_i32_1 : i32, i32, i32
  }
  func.func @transform_2(%arg0: i32) -> (i32, i32) {
    %c0_i32 = arith.constant 0 : i32
    %c0_i32_0 = arith.constant 0 : i32
    %c0_i32_1 = arith.constant 0 : i32
    return %c0_i32, %c0_i32_0 : i32, i32
  }
  func.func @transform_3(%arg0: i32) -> (i32, i32) {
    %c0_i32 = arith.constant 0 : i32
    %c0_i32_0 = arith.constant 0 : i32
    %c0_i32_1 = arith.constant 0 : i32
    return %c0_i32, %c0_i32_0 : i32, i32
  }
  func.func @transform_4(%arg0: i32) -> (i32, i32, i32) {
    %c0_i32 = arith.constant 0 : i32
    %c0_i32_0 = arith.constant 0 : i32
    %c0_i32_1 = arith.constant 0 : i32
    return %arg0, %c0_i32, %c0_i32_0 : i32, i32, i32
  }
}

</mosaic_0001>

<bundles_post_ra>
// kernel: tpu_custom_call.1
= control target key start
LH: loop header
LB: loop body
LE: loop exit
PB: predicated region body
PF: predicated region fallthrough
CT: control target
= control target key end

     0   :  { %9 = vsyncpa [#allocation4], 0  ;;  %s2824_s0 = inlined_call_operand.vmem [shape: f32[4,32,4], index: 0, kind: input, shape index: {}]   ;;  %s2825_s1 = inlined_call_operand.vmem [shape: f32[7,4,64], index: 1, kind: input, shape index: {}]   ;;  %s2826_s2 = inlined_call_operand.vmem [shape: f32[1,64], index: 2, kind: input, shape index: {}]   ;;  %s2827_s3 = inlined_call_operand.vmem [shape: f32[1,64], index: 3, kind: input, shape index: {}]   ;;  %s2828_s4 = inlined_call_operand.hbm [shape: f32[4,16,64], index: 4, kind: output, shape index: {}]  }
   0x1   :  { %11 = vsyncpa [#allocation4 + $0x1], 0  ;;  %s2559_s15 = smov 0   ;;  %s2561_s16 = smov 0  }
   0x2   :  { %s2563_s17 = smov 0   ;;  %s2565_s18 = smov 0  }
   0x3 LB: > { %s2580_s19 = sadd.s32 4294967295, %s2528_s18   ;;  %s1971_s20 = sadd.s32 4294967294, %s2528_s18   ;;  %s2528_s18 = sphi %s2565_s18, %s2835_s18   ;;  %s2524_s17 = sphi %s2563_s17, %s2834_s17   ;;  %s2520_s16 = sphi %s2561_s16, %s2833_s16   ;;  %s2516_s15 = sphi %s2559_s15, %s2832_s15  }
   0x4   : > { %s2584_s21 = sadd.s32 1, %s2528_s18   ;;  %s113_s22 = sadd.s32 1, %s2524_s17 }
   0x5   : > { %s110_s23 = ssub.s32 %s2528_s18, %s2584_s21  ;;  %p123_p0 = scmp.ne.s32.totalorder %s2524_s17, %s2520_s16 }
   0x6   : > { %p111_p1 = scmp.eq.s32.totalorder %s110_s23, 0  ;;  %p124_p2 = scmp.eq.s32.totalorder %s2580_s19, 1 }
   0x7   : > { %p129_p3 = scmp.ne.s32.totalorder %s2520_s16, %s2516_s15  ;;  %p130_p4 = scmp.eq.s32.totalorder %s1971_s20, 1 }
   0x8   : > { %s2595_s24 = scalar_select %p111_p1, %s2524_s17, %s113_s22  }
   0x9   : > { %p2597_p5 = por %p124_p2, %p123_p0  ;;  %p2601_p6 = por %p130_p4, %p129_p3 }
   0xa   : > { %p1974_p7 = scmp.ge.s32.totalorder %s2528_s18, 1  ;;  %p167_p8 = scmp.lt.s32.totalorder %s2528_s18, 3 }
   0xc   : > { %p168_p9 = pnand %p1974_p7, %p167_p8 }
   0xd   : > { %v1983_v0 = vld [vmem:[%s2825_s1 + $0x4] sm:$0xf] (!%p168_p9)  ;;  %vm286_vm0 = vcmask (!%p168_p9), 1043456   ;;  %s1976_s29 = sshll.u32 (!%p168_p9), %s2580_s19, 1  ;;  %vm202_vm1 = vcmask (!%p168_p9), 26624   ;;  %v2530_v1 = vmov (!%p168_p9), 0.0  }
   0xe   : > { %171 = sbr.rel (%p168_p9) target bundleno = 350 (0x15e), region = 36  ;;  %2198 = vmatprep.subr.msk.mxu0 (!%p168_p9), %vm286_vm0, %v1983_v0  ;;  %2220 = vmatprep.subr.msk.mxu1 (!%p168_p9), %vm286_vm0, %v1983_v0  ;;  %p2613_p10 = scmp.lt.s32.totalorder (!%p168_p9), %s1976_s29, 3  ;;  %203 = vst.msk [vmem:[#allocation2] sm:$0x7] (!%p168_p9), %vm202_vm1, %v2530_v1  ;;  %vm208_vm2 = vcmask (!%p168_p9), 31744   ;;  %vm214_vm3 = vcmask (!%p168_p9), 28672  }
   0xf   : > { %216 = vst.msk [vmem:[#allocation2 + $0x30] sm:$0x7] (!%p168_p9), %vm202_vm1, %v2530_v1  ;;  %v230_v2 = vld [vmem:[%s2825_s1] sm:$0xf] (!%p168_p9)  ;;  %vm228_vm4 = vcmask (!%p168_p9), 30720   ;;  %2199 = vmatpush3.msk.msra.mxu0 (!%p168_p9), %vm286_vm0, %v1983_v0  ;;  %2221 = vmatpush3.msk.msra.mxu1 (!%p168_p9), %vm286_vm0, %v1983_v0  ;;  %s191_s8 = sand.u32 (!%p168_p9), 1, %s2520_s16  }
  0x10   : > { %213 = vst.msk [vmem:[#allocation2 + $0x23] sm:$0xff] (!%p168_p9), %vm208_vm2, %v2530_v1  ;;  %226 = vst.msk [vmem:[#allocation2 + $0x53] sm:$0xff] (!%p168_p9), %vm208_vm2, %v2530_v1  ;;  %2209 = vmatprep.subr.msk.mxu0 (!%p168_p9), %vm286_vm0, %v230_v2  ;;  %2231 = vmatprep.subr.msk.mxu1 (!%p168_p9), %vm286_vm0, %v230_v2  ;;  %v2012_v17 = vld [vmem:[%s2825_s1 + $0x8] sm:$0xf] (!%p168_p9)  ;;  %v2027_v27 = vld [vmem:[%s2825_s1 + $0xc] sm:$0xf] (!%p168_p9) }
  0x11   : > { %215 = vst.msk [vmem:[#allocation2 + $0x2b] sm:$0x1f] (!%p168_p9), %vm214_vm3, %v2530_v1  ;;  %227 = vst.msk [vmem:[#allocation2 + $0x5b] sm:$0x1f] (!%p168_p9), %vm214_vm3, %v2530_v1  ;;  %v2042_v34 = vld [vmem:[%s2825_s1 + $0x10] sm:$0xf] (!%p168_p9) }
  0x12   : > { %229 = vst.msk [vmem:[#allocation2 + $0x60] sm:$0x7f] (!%p168_p9), %vm228_vm4, %v2530_v1  ;;  %v2057_v41 = vld [vmem:[%s2825_s1 + $0x14] sm:$0xf] (!%p168_p9)  ;;  %v2072_v48 = vld [vmem:[%s2825_s1 + $0x18] sm:$0xf] (!%p168_p9) }
  0x13   : > { %v2087_v0 = vld [vmem:[%s2826_s2] ss:$0 sm:$0xff] (!%p168_p9)  ;;  %s1975_s9 = sshll.u32 (!%p168_p9), %s191_s8, 5  ;;  %vm1888_vm5 = vcmask (!%p168_p9), 523264   ;;  %s2099_s11 = sshll.u32 (!%p168_p9), %s2580_s19, 9 }
  0x14   : > { %s2776_s20 = scalar_lea.hbm (!%p168_p9), %s2828_s4, %s2099_s11  ;;  %s2783_s19 = scalar_lea.sflag (!%p168_p9), [#allocation4], %s191_s8 }
  0x15   : > { %s2837_s29 = smov (!%p2613_p10, %s1976_s29), 3  ;;  %s2531_s23 = smov [#allocation3]  }
  0x16   : > { %s2097_s7 = sshll.u32 %s2837_s29, 5  ;;  %s2470_s27 = sshll.u32 %s2531_s23, 4  ;;  %s2471_s27 = int_to_ptr.vmem [resolvable:$false] %s2470_s27 }
  0x17   : > { %s199_s10 = scalar_lea.vmem %s2824_s0, %s2097_s7  ;;  %s2472_s28 = scalar_lea.vmem %s2471_s27, 1024 }
  0x18   : > { %v204_v3 = vld [vmem:[%s199_s10] sm:$0xff]  ;;  %v205_v4 = vld [vmem:[%s199_s10 + $0x8] sm:$0xff]  ;;  %v206_v5 = vld [vmem:[%s199_s10 + $0x10] sm:$0xff] }
  0x19   : > { %209 = vst.msk [vmem:[#allocation2 + $0x3] sm:$0xff] %vm208_vm2, %v204_v3  ;;  %210 = vst.msk [vmem:[#allocation2 + $0xb] sm:$0xff] %vm208_vm2, %v205_v4  ;;  %v207_v6 = vld [vmem:[%s199_s10 + $0x18] sm:$0xff]  ;;  %v1979_v7 = vld [vmem:[%s199_s10 + $0x20] sm:$0xff] }
  0x1a   : > { %211 = vst.msk [vmem:[#allocation2 + $0x13] sm:$0xff] %vm208_vm2, %v206_v5  ;;  %v1980_v8 = vld [vmem:[%s199_s10 + $0x28] sm:$0xff]  ;;  %212 = vst.msk [vmem:[#allocation2 + $0x1b] sm:$0xff] %vm208_vm2, %v207_v6  ;;  %v1981_v9 = vld [vmem:[%s199_s10 + $0x30] sm:$0xff] }
  0x1b   : > { %222 = vst.msk [vmem:[#allocation2 + $0x33] sm:$0xff] %vm208_vm2, %v1979_v7  ;;  %223 = vst.msk [vmem:[#allocation2 + $0x3b] sm:$0xff] %vm208_vm2, %v1980_v8  ;;  %v1982_v10 = vld [vmem:[%s199_s10 + $0x38] sm:$0xff]  ;;  %v708_v33 = vld [vmem:[#allocation2 + $0x23] ss:$2 sm:$0xff]  ;;  %s193_s10 = scalar_lea.vmem [#allocation3], %s1975_s9 }
  0x1c   : > { %224 = vst.msk [vmem:[#allocation2 + $0x43] sm:$0xff] %vm208_vm2, %v1981_v9  ;;  %225 = vst.msk [vmem:[#allocation2 + $0x4b] sm:$0xff] %vm208_vm2, %v1982_v10  ;;  %v714_v37 = vld [vmem:[#allocation2 + $0x53] ss:$2 sm:$0xff]  ;;  %v937_v40 = vld [vmem:[#allocation2 + $0x24] ss:$2 sm:$0xff] }
  0x1d   : > { %v943_v44 = vld [vmem:[#allocation2 + $0x54] ss:$2 sm:$0xff]  ;;  %v1172_v51 = vld [vmem:[#allocation2 + $0x55] ss:$2 sm:$0xff]  ;;  %s1909_s12 = sshll.u32 %s193_s10, 4  ;;  %s2778_s12 = int_to_ptr.vmem [resolvable:$true] %s1909_s12 }
  0x1e   : > { %v1401_v57 = vld [vmem:[#allocation2 + $0x56] ss:$2 sm:$0xff]  ;;  %v1630_v63 = vld [vmem:[#allocation2 + $0x57] ss:$2 sm:$0xff]  ;;  %s2466_s22 = scalar_lea.vmem %s2778_s12, 512  ;;  %p2473_p0 = scmp.lt.s32.totalorder %s2778_s12, %s2471_s27 }
  0x1f   : > { %p2467_p11 = scmp.ne.s32.totalorder %s2778_s12, %s2466_s22  ;;  %p2474_p1 = scmp.lt.s32.totalorder %s2472_s28, %s2466_s22 }
  0x20   : > { %v243_v11 = vld [vmem:[#allocation2 + $0x1] ss:$2 sm:$0xff]  ;;  %v257_v12 = vld [vmem:[#allocation2 + $0x2] ss:$2 sm:$0xff] }
  0x21   : > { %2200 = vmatprep.mubr.msk.f32.mxu0 %vm208_vm2, %v243_v11  ;;  %2222 = vmatprep.mubr.msk.f32.mxu1 %vm208_vm2, %v257_v12  ;;  %v245_v13 = vld [vmem:[#allocation2 + $0x11] ss:$2 sm:$0xff]  ;;  %v259_v14 = vld [vmem:[#allocation2 + $0x12] ss:$2 sm:$0xff]  ;;  %v247_v15 = vld [vmem:[#allocation2 + $0x21] ss:$2 sm:$0xff]  ;;  %p2468_p12 = pnand %p2467_p11, %p2597_p5  ;;  %p2475_p2 = por %p2474_p1, %p2473_p0 }
  0x22   : > { %2201 = vmatmul.mubr.msk.f32.vlgmr.msra.gmra.mrb[0].mxu0 %vm208_vm2, %v245_v13  ;;  %2223 = vmatmul.mubr.msk.f32.vlgmr.msra.gmra.mrb[0].mxu1 %vm208_vm2, %v259_v14  ;;  %v261_v16 = vld [vmem:[#allocation2 + $0x22] ss:$2 sm:$0xff]  ;;  %v249_v18 = vld [vmem:[#allocation2 + $0x31] ss:$2 sm:$0xff]  ;;  %v263_v19 = vld [vmem:[#allocation2 + $0x32] ss:$2 sm:$0xff] }
  0x23   : > { %2210 = vmatpush3.msk.msra.mxu0 %vm286_vm0, %v230_v2  ;;  %2232 = vmatpush3.msk.msra.mxu1 %vm286_vm0, %v230_v2  ;;  %v251_v20 = vld [vmem:[#allocation2 + $0x41] ss:$2 sm:$0xff]  ;;  %v265_v21 = vld [vmem:[#allocation2 + $0x42] ss:$2 sm:$0xff]  ;;  %v253_v22 = vld [vmem:[#allocation2 + $0x51] ss:$2 sm:$0xff]  ;;  %p2469_p13 = pneg %p2468_p12 }
  0x24   : > { %2203 = vmatprep.mubr.msk.f32.mxu0 %vm208_vm2, %v247_v15  ;;  %2225 = vmatprep.mubr.msk.f32.mxu1 %vm208_vm2, %v261_v16  ;;  %v267_v23 = vld [vmem:[#allocation2 + $0x52] ss:$2 sm:$0xff]  ;;  %v704_v31 = vld [vmem:[#allocation2 + $0x3] ss:$2 sm:$0xff]  ;;  %v706_v32 = vld [vmem:[#allocation2 + $0x13] ss:$2 sm:$0xff] }
  0x25   : > { %2242 = vmatprep.subr.msk.mxu0 %vm286_vm0, %v2012_v17  ;;  %2253 = vmatprep.subr.msk.mxu1 %vm286_vm0, %v2012_v17  ;;  %v231_v24 = vld [vmem:[#allocation2] ss:$2 sm:$0xff]  ;;  %v233_v25 = vld [vmem:[#allocation2 + $0x10] ss:$2 sm:$0xff]  ;;  %v710_v35 = vld [vmem:[#allocation2 + $0x33] ss:$2 sm:$0xff]  ;;  %p2476_p3 = pnand %p2475_p2, %p2469_p13 }
  0x26   : > { %2204 = vmatmul.mubr.msk.f32.gmra.mrb[2].mxu0 %vm208_vm2, %v249_v18  ;;  %2226 = vmatmul.mubr.msk.f32.gmra.mrb[2].mxu1 %vm208_vm2, %v263_v19  ;;  %v235_v26 = vld [vmem:[#allocation2 + $0x20] ss:$2 sm:$0xff]  ;;  %v237_v28 = vld [vmem:[#allocation2 + $0x30] ss:$2 sm:$0xff]  ;;  %v712_v36 = vld [vmem:[#allocation2 + $0x43] ss:$2 sm:$0xff] }
  0x27   : > { %2206 = vmatprep.mubr.msk.f32.mxu0 %vm208_vm2, %v251_v20  ;;  %2228 = vmatprep.mubr.msk.f32.mxu1 %vm208_vm2, %v265_v21  ;;  %v239_v29 = vld [vmem:[#allocation2 + $0x40] ss:$2 sm:$0xff]  ;;  %v241_v30 = vld [vmem:[#allocation2 + $0x50] ss:$2 sm:$0xff]  ;;  %v1162_v45 = vld [vmem:[#allocation2 + $0x5] ss:$2 sm:$0xff] }
  0x28   : > { %v933_v38 = vld [vmem:[#allocation2 + $0x4] ss:$2 sm:$0xff]  ;;  %v935_v39 = vld [vmem:[#allocation2 + $0x14] ss:$2 sm:$0xff]  ;;  %v1164_v46 = vld [vmem:[#allocation2 + $0x15] ss:$2 sm:$0xff] }
  0x29   : > { %v939_v42 = vld [vmem:[#allocation2 + $0x34] ss:$2 sm:$0xff]  ;;  %v941_v43 = vld [vmem:[#allocation2 + $0x44] ss:$2 sm:$0xff]  ;;  %v1166_v47 = vld [vmem:[#allocation2 + $0x25] ss:$2 sm:$0xff] }
  0x2a   : > { %2207 = vmatmul.mubr.msk.f32.gmra.mrb[4].mxu0 %vm208_vm2, %v253_v22  ;;  %2229 = vmatmul.mubr.msk.f32.gmra.mrb[4].mxu1 %vm208_vm2, %v267_v23  ;;  %v1168_v49 = vld [vmem:[#allocation2 + $0x35] ss:$2 sm:$0xff]  ;;  %v1170_v50 = vld [vmem:[#allocation2 + $0x45] ss:$2 sm:$0xff]  ;;  %v1391_v52 = vld [vmem:[#allocation2 + $0x6] ss:$2 sm:$0xff] }
  0x2b   : > { %2211 = vmatprep.mubr.msk.f32.mxu0 %vm208_vm2, %v231_v24  ;;  %2233 = vmatprep.mubr.msk.f32.mxu1 %vm208_vm2, %v243_v11  ;;  %v1393_v53 = vld [vmem:[#allocation2 + $0x16] ss:$2 sm:$0xff]  ;;  %v1395_v54 = vld [vmem:[#allocation2 + $0x26] ss:$2 sm:$0xff]  ;;  %v1620_v58 = vld [vmem:[#allocation2 + $0x7] ss:$2 sm:$0xff] }
  0x2c   : > { %v1397_v55 = vld [vmem:[#allocation2 + $0x36] ss:$2 sm:$0xff]  ;;  %v1399_v56 = vld [vmem:[#allocation2 + $0x46] ss:$2 sm:$0xff]  ;;  %v1622_v59 = vld [vmem:[#allocation2 + $0x17] ss:$2 sm:$0xff] }
  0x2d   : > { %v1624_v60 = vld [vmem:[#allocation2 + $0x27] ss:$2 sm:$0xff]  ;;  %v1626_v61 = vld [vmem:[#allocation2 + $0x37] ss:$2 sm:$0xff]  ;;  %v2088_v2 = vld [vmem:[%s2827_s3] ss:$0 sm:$0xff] }
  0x2e   : > { %2212 = vmatmul.mubr.msk.f32.vlgmr.msra.gmra.mrb[0].mxu0 %vm208_vm2, %v233_v25  ;;  %2234 = vmatmul.mubr.msk.f32.vlgmr.msra.gmra.mrb[0].mxu1 %vm208_vm2, %v245_v13  ;;  %v1628_v62 = vld [vmem:[#allocation2 + $0x47] ss:$2 sm:$0xff] }
  0x2f   : > { %2243 = vmatpush3.msk.msra.mxu0 %vm286_vm0, %v2012_v17  ;;  %2254 = vmatpush3.msk.msra.mxu1 %vm286_vm0, %v2012_v17 }
  0x30   : > { %2214 = vmatprep.mubr.msk.f32.mxu0 %vm208_vm2, %v235_v26  ;;  %2236 = vmatprep.mubr.msk.f32.mxu1 %vm208_vm2, %v247_v15 }
  0x31   : > { %2264 = vmatprep.subr.msk.mxu0 %vm286_vm0, %v2027_v27  ;;  %2275 = vmatprep.subr.msk.mxu1 %vm286_vm0, %v2027_v27 }
  0x32   : > { %2215 = vmatmul.mubr.msk.f32.gmra.mrb[2].mxu0 %vm208_vm2, %v237_v28  ;;  %2237 = vmatmul.mubr.msk.f32.gmra.mrb[2].mxu1 %vm208_vm2, %v249_v18 }
  0x33   : > { %2217 = vmatprep.mubr.msk.f32.mxu0 %vm208_vm2, %v239_v29  ;;  %2239 = vmatprep.mubr.msk.f32.mxu1 %vm208_vm2, %v251_v20 }
  0x36   : > { %2218 = vmatmul.mubr.msk.f32.gmra.mrb[4].mxu0 %vm208_vm2, %v241_v30  ;;  %2240 = vmatmul.mubr.msk.f32.gmra.mrb[4].mxu1 %vm208_vm2, %v253_v22 }
  0x37   : > { %2244 = vmatprep.mubr.msk.f32.mxu0 %vm208_vm2, %v257_v12  ;;  %2255 = vmatprep.mubr.msk.f32.mxu1 %vm208_vm2, %v704_v31 }
  0x3a   : > { %2245 = vmatmul.mubr.msk.f32.vlgmr.msra.gmra.mrb[0].mxu0 %vm208_vm2, %v259_v14  ;;  %2256 = vmatmul.mubr.msk.f32.vlgmr.msra.gmra.mrb[0].mxu1 %vm208_vm2, %v706_v32 }
  0x3b   : > { %2265 = vmatpush3.msk.msra.mxu0 %vm286_vm0, %v2027_v27  ;;  %2276 = vmatpush3.msk.msra.mxu1 %vm286_vm0, %v2027_v27 }
  0x3c   : > { %2247 = vmatprep.mubr.msk.f32.mxu0 %vm208_vm2, %v261_v16  ;;  %2258 = vmatprep.mubr.msk.f32.mxu1 %vm208_vm2, %v708_v33 }
  0x3d   : > { %2286 = vmatprep.subr.msk.mxu0 %vm286_vm0, %v2042_v34  ;;  %2297 = vmatprep.subr.msk.mxu1 %vm286_vm0, %v2042_v34 }
  0x3e   : > { %2248 = vmatmul.mubr.msk.f32.gmra.mrb[2].mxu0 %vm208_vm2, %v263_v19  ;;  %2259 = vmatmul.mubr.msk.f32.gmra.mrb[2].mxu1 %vm208_vm2, %v710_v35 }
  0x3f   : > { %2250 = vmatprep.mubr.msk.f32.mxu0 %vm208_vm2, %v265_v21  ;;  %2261 = vmatprep.mubr.msk.f32.mxu1 %vm208_vm2, %v712_v36 }
  0x42   : > { %2251 = vmatmul.mubr.msk.f32.gmra.mrb[4].mxu0 %vm208_vm2, %v267_v23  ;;  %2262 = vmatmul.mubr.msk.f32.gmra.mrb[4].mxu1 %vm208_vm2, %v714_v37 }
  0x43   : > { %2266 = vmatprep.mubr.msk.f32.mxu0 %vm208_vm2, %v704_v31  ;;  %2277 = vmatprep.mubr.msk.f32.mxu1 %vm208_vm2, %v933_v38 }
  0x46   : > { %2267 = vmatmul.mubr.msk.f32.vlgmr.msra.gmra.mrb[0].mxu0 %vm208_vm2, %v706_v32  ;;  %2278 = vmatmul.mubr.msk.f32.vlgmr.msra.gmra.mrb[0].mxu1 %vm208_vm2, %v935_v39 }
  0x47   : > { %2287 = vmatpush3.msk.msra.mxu0 %vm286_vm0, %v2042_v34  ;;  %2298 = vmatpush3.msk.msra.mxu1 %vm286_vm0, %v2042_v34 }
  0x48   : > { %2269 = vmatprep.mubr.msk.f32.mxu0 %vm208_vm2, %v708_v33  ;;  %2280 = vmatprep.mubr.msk.f32.mxu1 %vm208_vm2, %v937_v40 }
  0x49   : > { %2308 = vmatprep.subr.msk.mxu0 %vm286_vm0, %v2057_v41  ;;  %2319 = vmatprep.subr.msk.mxu1 %vm286_vm0, %v2057_v41 }
  0x4a   : > { %2270 = vmatmul.mubr.msk.f32.gmra.mrb[2].mxu0 %vm208_vm2, %v710_v35  ;;  %2281 = vmatmul.mubr.msk.f32.gmra.mrb[2].mxu1 %vm208_vm2, %v939_v42 }
  0x4b   : > { %2272 = vmatprep.mubr.msk.f32.mxu0 %vm208_vm2, %v712_v36  ;;  %2283 = vmatprep.mubr.msk.f32.mxu1 %vm208_vm2, %v941_v43 }
  0x4e   : > { %2273 = vmatmul.mubr.msk.f32.gmra.mrb[4].mxu0 %vm208_vm2, %v714_v37  ;;  %2284 = vmatmul.mubr.msk.f32.gmra.mrb[4].mxu1 %vm208_vm2, %v943_v44 }
  0x4f   : > { %2288 = vmatprep.mubr.msk.f32.mxu0 %vm208_vm2, %v933_v38  ;;  %2299 = vmatprep.mubr.msk.f32.mxu1 %vm208_vm2, %v1162_v45 }
  0x52   : > { %2289 = vmatmul.mubr.msk.f32.vlgmr.msra.gmra.mrb[0].mxu0 %vm208_vm2, %v935_v39  ;;  %2300 = vmatmul.mubr.msk.f32.vlgmr.msra.gmra.mrb[0].mxu1 %vm208_vm2, %v1164_v46 }
  0x53   : > { %2309 = vmatpush3.msk.msra.mxu0 %vm286_vm0, %v2057_v41  ;;  %2320 = vmatpush3.msk.msra.mxu1 %vm286_vm0, %v2057_v41 }
  0x54   : > { %2291 = vmatprep.mubr.msk.f32.mxu0 %vm208_vm2, %v937_v40  ;;  %2302 = vmatprep.mubr.msk.f32.mxu1 %vm208_vm2, %v1166_v47 }
  0x55   : > { %2330 = vmatprep.subr.msk.mxu0 %vm286_vm0, %v2072_v48  ;;  %2341 = vmatprep.subr.msk.mxu1 %vm286_vm0, %v2072_v48 }
  0x56   : > { %2292 = vmatmul.mubr.msk.f32.gmra.mrb[2].mxu0 %vm208_vm2, %v939_v42  ;;  %2303 = vmatmul.mubr.msk.f32.gmra.mrb[2].mxu1 %vm208_vm2, %v1168_v49 }
  0x57   : > { %2294 = vmatprep.mubr.msk.f32.mxu0 %vm208_vm2, %v941_v43  ;;  %2305 = vmatprep.mubr.msk.f32.mxu1 %vm208_vm2, %v1170_v50 }
  0x5a   : > { %2295 = vmatmul.mubr.msk.f32.gmra.mrb[4].mxu0 %vm208_vm2, %v943_v44  ;;  %2306 = vmatmul.mubr.msk.f32.gmra.mrb[4].mxu1 %vm208_vm2, %v1172_v51 }
  0x5b   : > { %2310 = vmatprep.mubr.msk.f32.mxu0 %vm208_vm2, %v1162_v45  ;;  %2321 = vmatprep.mubr.msk.f32.mxu1 %vm208_vm2, %v1391_v52 }
  0x5e   : > { %2311 = vmatmul.mubr.msk.f32.vlgmr.msra.gmra.mrb[0].mxu0 %vm208_vm2, %v1164_v46  ;;  %2322 = vmatmul.mubr.msk.f32.vlgmr.msra.gmra.mrb[0].mxu1 %vm208_vm2, %v1393_v53 }
  0x5f   : > { %2331 = vmatpush3.msk.msra.mxu0 %vm286_vm0, %v2072_v48  ;;  %2342 = vmatpush3.msk.msra.mxu1 %vm286_vm0, %v2072_v48 }
  0x60   : > { %2313 = vmatprep.mubr.msk.f32.mxu0 %vm208_vm2, %v1166_v47  ;;  %2324 = vmatprep.mubr.msk.f32.mxu1 %vm208_vm2, %v1395_v54 }
  0x62   : > { %2314 = vmatmul.mubr.msk.f32.gmra.mrb[2].mxu0 %vm208_vm2, %v1168_v49  ;;  %2325 = vmatmul.mubr.msk.f32.gmra.mrb[2].mxu1 %vm208_vm2, %v1397_v55 }
  0x63   : > { %2316 = vmatprep.mubr.msk.f32.mxu0 %vm208_vm2, %v1170_v50  ;;  %2327 = vmatprep.mubr.msk.f32.mxu1 %vm208_vm2, %v1399_v56 }
  0x66   : > { %2317 = vmatmul.mubr.msk.f32.gmra.mrb[4].mxu0 %vm208_vm2, %v1172_v51  ;;  %2328 = vmatmul.mubr.msk.f32.gmra.mrb[4].mxu1 %vm208_vm2, %v1401_v57 }
  0x67   : > { %2332 = vmatprep.mubr.msk.f32.mxu0 %vm208_vm2, %v1391_v52  ;;  %2343 = vmatprep.mubr.msk.f32.mxu1 %vm208_vm2, %v1620_v58 }
  0x6a   : > { %2333 = vmatmul.mubr.msk.f32.vlgmr.msra.gmra.mrb[0].mxu0 %vm208_vm2, %v1393_v53  ;;  %2344 = vmatmul.mubr.msk.f32.vlgmr.msra.gmra.mrb[0].mxu1 %vm208_vm2, %v1622_v59 }
  0x6b   : > { %2335 = vmatprep.mubr.msk.f32.mxu0 %vm208_vm2, %v1395_v54  ;;  %2346 = vmatprep.mubr.msk.f32.mxu1 %vm208_vm2, %v1624_v60 }
  0x6e   : > { %2336 = vmatmul.mubr.msk.f32.gmra.mrb[2].mxu0 %vm208_vm2, %v1397_v55  ;;  %2347 = vmatmul.mubr.msk.f32.gmra.mrb[2].mxu1 %vm208_vm2, %v1626_v61 }
  0x6f   : > { %2338 = vmatprep.mubr.msk.f32.mxu0 %vm208_vm2, %v1399_v56  ;;  %2349 = vmatprep.mubr.msk.f32.mxu1 %vm208_vm2, %v1628_v62 }
  0x72   : > { %2339 = vmatmul.mubr.msk.f32.gmra.mrb[4].mxu0 %vm208_vm2, %v1401_v57  ;;  %2350 = vmatmul.mubr.msk.f32.gmra.mrb[4].mxu1 %vm208_vm2, %v1630_v63 }
 0x13d   : > { %v2334_v1 = vpop.f32.mrb[0].mxu0  ;;  %v2345_v3 = vpop.f32.mrb[0].mxu1 }
 0x13e   : > { %v1855_v4 = vmul.f32 %v2334_v1, %v2087_v0  ;;  %v1873_v5 = vmul.f32 %v2345_v3, %v2087_v0  ;;  %v1700_v6 = vpop.f32.mrb[1].mxu0  ;;  %v1815_v7 = vpop.f32.mrb[1].mxu1 }
 0x13f   : > { %v1854_v8 = vmul.f32 %v2087_v0, %v1700_v6  ;;  %v1872_v9 = vmul.f32 %v2087_v0, %v1815_v7 }
 0x140   : > { %v1865_v10 = vadd.f32 %v2088_v2, %v1855_v4  ;;  %v1877_v11 = vadd.f32 %v2088_v2, %v1873_v5 }
 0x141   : > { %v1864_v12 = vadd.f32 %v2088_v2, %v1854_v8  ;;  %v1876_v13 = vadd.f32 %v2088_v2, %v1872_v9  ;;  %v2337_v14 = vpop.f32.mrb[2].mxu0  ;;  %v2348_v15 = vpop.f32.mrb[2].mxu1 }
 0x142   : > { %v1869_v16 = vmax.f32 %v1865_v10, 0.0  ;;  %v1881_v17 = vmax.f32 %v1877_v11, 0.0  ;;  %v1856_v18 = vmul.f32 %v2337_v14, %v2087_v0  ;;  %v1874_v19 = vmul.f32 %v2348_v15, %v2087_v0  ;;  %v1710_v20 = vpop.f32.mrb[3].mxu0  ;;  %v1825_v21 = vpop.f32.mrb[3].mxu1 }
 0x143   : > { %v1868_v22 = vmax.f32 %v1864_v12, 0.0  ;;  %v1880_v23 = vmax.f32 %v1876_v13, 0.0 }
 0x144   : > { %v1885_v24 = vmax.f32 %v1869_v16, %v1881_v17  ;;  %v1866_v25 = vadd.f32 %v2088_v2, %v1856_v18  ;;  %v1878_v26 = vadd.f32 %v2088_v2, %v1874_v19 }
 0x145   : > { %v1884_v27 = vmax.f32 %v1868_v22, %v1880_v23  ;;  %v2340_v28 = vpop.f32.mrb[4].mxu0  ;;  %v2351_v29 = vpop.f32.mrb[4].mxu1 }
 0x146   : > { %1890 = vst.msk [vmem:[%s193_s10 + $0x8] sm:$0xff] %vm1888_vm5, %v1885_v24  ;;  %v1870_v30 = vmax.f32 %v1866_v25, 0.0  ;;  %v1882_v31 = vmax.f32 %v1878_v26, 0.0  ;;  %v1719_v32 = vpop.f32.mrb[5].mxu0  ;;  %v1834_v33 = vpop.f32.mrb[5].mxu1 }
 0x147   : > { %1889 = vst.msk [vmem:[%s193_s10] sm:$0xff] %vm1888_vm5, %v1884_v27  ;;  %v1857_v34 = vmul.f32 %v2087_v0, %v1719_v32  ;;  %v1875_v35 = vmul.f32 %v2087_v0, %v1834_v33 }
 0x148   : > { %v1886_v36 = vmax.f32 %v1870_v30, %v1882_v31 }
 0x149   : > { %v1867_v37 = vadd.f32 %v2088_v2, %v1857_v34  ;;  %v1879_v38 = vadd.f32 %v2088_v2, %v1875_v35 }
 0x14a   : > { %2089 = vst.msk [vmem:[%s193_s10 + $0x10] sm:$0xff] %vm1888_vm5, %v1886_v36 }
 0x14b   : > { %v1871_v39 = vmax.f32 %v1867_v37, 0.0  ;;  %v1883_v40 = vmax.f32 %v1879_v38, 0.0 }
 0x14d   : > { %v1887_v41 = vmax.f32 %v1871_v39, %v1883_v40 }
 0x14f   : > { %2090 = vst.msk [vmem:[%s193_s10 + $0x18] sm:$0xff] %vm1888_vm5, %v1887_v41 }
 0x150   : > { %2479 = shalt.err (!%p2476_p3)
}
 0x151   : > { %s2480_s29 = scalar_lea.hbm %s2776_s20, 512  ;;  %s2484_s6 = scalar_lea.hbm %s2828_s4, 1024 }
 0x152   : > { %p2481_p4 = scmp.ne.s32.totalorder %s2776_s20, %s2480_s29  ;;  %p2485_p9 = scmp.lt.u32.totalorder %s2776_s20, %s2828_s4 }
 0x153   : > { %p2486_p10 = scmp.lt.u32.totalorder %s2484_s6, %s2480_s29  ;;  %p2488_p12 = scmp.lt.u32.totalorder %s2480_s29, %s2776_s20 }
 0x154   : > { %p2482_p7 = pnand %p2481_p4, %p2597_p5 }
 0x155   : > { %p2487_p11 = por %p2486_p10, %p2485_p9 }
 0x156   : > { %p2483_p8 = pneg %p2482_p7 }
 0x157   : > { %p2489_p13 = por %p2488_p12, %p2487_p11 }
 0x159   : > { %p2490_p0 = pnand %p2489_p13, %p2483_p8 }
 0x15b   : > { %2493 = shalt.err (!%p2490_p0)
}
 0x15c   : > { %s2532_s9 = smov 128   ;;  %s2533_s10 = smov 8  }
 0x15d   : > { %2424 = dma.vmem_to_hbm [thread:$0]  (%p2597_p5), %s2778_s12, 512, %s2776_s20, %s2783_s19, %s2532_s9, %s2532_s9, %s2533_s10  }
 0x15e PF: > { %p2430_p1 = scmp.ge.s32.totalorder %s2528_s18, 2  ;;  %s1924_s11 = sand.u32 1, %s2516_s15  }
 0x15f   : > { %s1925_s13 = scalar_lea.sflag [#allocation4], %s1924_s11 }
 0x160   : > { %p2427_p2 = pnand %p2430_p1, %p2601_p6 }
 0x162   : > { %2511 = dma.done.wait (!%p2427_p2), %s1925_s13, 512  }
 0x163   : > { %2513 = vsyncadd (!%p2427_p2), %s1925_s13, 4294966784  ;;  %p14_p3 = scmp.ge.s32.totalorder %s2584_s21, 4   ;;  %s2832_s15 = smov %s2520_s16 }
 0x164   : > { %s2833_s16 = smov %s2524_s17  ;;  %s2834_s17 = smov %s2595_s24 }
 0x165   : > { %s2835_s18 = smov %s2584_s21  ;;  %16 = sbr.rel (!%p14_p3) target bundleno = 3 (0x3), region = 126 }
 0x16c   :  { %1930 = vsyncpa [#allocation4], 1 }
 0x16d   :  { %1932 = vsyncpa [#allocation4 + $0x1], 1 }

</bundles_post_ra>
